<compile_context>
chip_gen: v7x
topology: tpu7x:2x2x1
jax: 0.10.0
libtpu: 0.0.40
codegen_flags: <defaults>
</compile_context>

<pallas_src>
import functools
import math

import jax
import jax.numpy as jnp
from jax.experimental import pallas as pl
from jax.experimental.pallas import tpu as pltpu

_BN_EPS = 1e-5


# --------------------------------- kernel -----------------------------------
def muformer_decoder_kernel(
    x1_ref, x2_ref,          # (BB, L, E)        inputs (f32 or bf16)
    wr_ref,                  # (E, H)            fc_reduce weight (in, out)
    wpa_ref, wpb_ref,        # (2H, 2H)          block-diag pair-head weights
    vh_ref,                  # (2, H)            rows: [fc_reduce bias, fc_attn weight]
    v2h_ref,                 # (4, 2H)           rows: [pair bias, BN scale, BN shift, wo]
    sc_ref,                  # (2,) SMEM         [fc_attn bias, bo1 + bo2]
    o_ref,                   # (1, BB, 1)        output scores
):
    BB, L, _ = x1_ref.shape
    H = wr_ref.shape[1]

    wr = wr_ref[...]                             # (E, H)
    br = vh_ref[0:1, :]                          # (1, H)   fc_reduce bias
    wa = vh_ref[1:2, :].reshape(1, 1, H)         # (1,1,H)  fc_attn weight
    ba = sc_ref[0]                               # scalar   fc_attn bias
    bo = sc_ref[1]                               # scalar   bo1 + bo2

    # fc_reduce for both inputs: two back-to-back (BB*L,E)@(E,H) MXU matmuls
    # sharing the same resident RHS, f32 accumulation.
    def reduce(x_ref):
        x = x_ref[...].reshape(BB * L, x_ref.shape[-1])
        y = jnp.dot(x, wr, preferred_element_type=jnp.float32)       # (BB*L, H)
        return (y + br).reshape(BB, L, H)

    y1 = reduce(x1_ref)
    y2 = reduce(x2_ref)

    # Attention-weighted repr + first/last pooled repr, fully vectorized over BB.
    def pooled(y):
        attn = jnp.sum(y * wa, axis=-1, keepdims=True) + ba          # (BB, L, 1)
        xw = jnp.sum(y * attn, axis=1)                               # (BB, H)
        xs = (y[:, 0, :] + y[:, L - 1, :]) * 0.5                     # (BB, H)
        return jnp.concatenate([xw, xs], axis=-1)                    # (BB, 2H)

    a = pooled(y1)
    b = pooled(y2)

    # Both pair heads fused: block-diag weights -> one (BB,2H) z, one BN/tanh
    # pass, one lane reduction.  Linear(2H,H) on cat([u,v]) is computed as the
    # split-weight sum  u @ Wa + v @ Wb.
    z = (jnp.dot(a, wpa_ref[...], preferred_element_type=jnp.float32)
         + jnp.dot(b, wpb_ref[...], preferred_element_type=jnp.float32)
         + v2h_ref[0:1, :])                                          # (BB, 2H)
    z = z * v2h_ref[1:2, :] + v2h_ref[2:3, :]      # eval BatchNorm1d (pre-folded)
    z = jnp.tanh(z)
    score = jnp.sum(z * v2h_ref[3:4, :], axis=-1, keepdims=True) + bo  # (BB, 1)
    o_ref[0] = score.astype(o_ref.dtype)


# ------------------------- generation-aware sizing ---------------------------
def _tpu_vmem_capacity_bytes():
    try:
        info = pltpu.get_tpu_info()
        return int(getattr(info, "vmem_capacity_bytes", 64 << 20))
    except Exception:
        return 64 << 20


def _num_tensorcores():
    # Best-effort: >1 only on chips exposing multiple TensorCores per device.
    try:
        return max(1, int(getattr(jax.devices()[0], "num_cores", 1)))
    except Exception:
        return 1


def _pick_batch_block(B, L, E, H, x_itemsize, vmem_budget_bytes, num_cores):
    """Largest batch block bb that divides B and whose per-step working set
    fits the budget; on multi-TensorCore chips prefer a grid-step count that
    is a multiple of the core count so the 'parallel' axis splits evenly."""
    def footprint(bb):
        x_tiles = 2 * 2 * bb * L * E * x_itemsize      # x1+x2 tiles, double-buffered
        y_live = 2 * 2 * bb * L * H * 4                # y1/y2 + one f32 transient each
        return x_tiles + y_live

    fitting = [bb for bb in range(1, B + 1)
               if B % bb == 0 and footprint(bb) <= vmem_budget_bytes]
    if not fitting:
        return 1
    if num_cores > 1 and B >= num_cores:
        even = [bb for bb in fitting if (B // bb) % num_cores == 0]
        if even:
            return max(even)
    return max(fitting)


# --------------------------------- wrapper ----------------------------------
def muformer_decoder(x1, x2, params, *, batch_block=None,
                     compute_dtype=jnp.float32):
    """Fused Pallas forward pass of RawMuformerDecoder (inference mode)."""
    B, L, E = x1.shape
    H = params["wr"].shape[1]
    assert x2.shape == (B, L, E)

    vmem_cap = _tpu_vmem_capacity_bytes()
    vmem_limit = max(32 << 20, min(vmem_cap * 3 // 4, 96 << 20))
    x_itemsize = jnp.dtype(compute_dtype).itemsize

    bb = batch_block if batch_block is not None else _pick_batch_block(
        B, L, E, H, x_itemsize, vmem_limit // 2, _num_tensorcores())
    assert B % bb == 0, "batch_block must divide the batch size"
    nb = B // bb

    # ---- fold + pack the small parameters once, outside the kernel ----------
    def bn_fold(gamma, beta, mean, var):
        scale = gamma / jnp.sqrt(var + _BN_EPS)
        return scale[None, :], (beta - mean * scale)[None, :]

    bn1s, bn1h = bn_fold(params["bn1_gamma"], params["bn1_beta"],
                         params["bn1_mean"], params["bn1_var"])
    bn2s, bn2h = bn_fold(params["bn2_gamma"], params["bn2_beta"],
                         params["bn2_mean"], params["bn2_var"])

    def block_diag(top_left, bottom_right):
        z = jnp.zeros_like(top_left)
        return jnp.concatenate(
            [jnp.concatenate([top_left, z], axis=1),
             jnp.concatenate([z, bottom_right], axis=1)], axis=0)

    wpa = block_diag(params["wp1a"], params["wp2a"])             # (2H, 2H)
    wpb = block_diag(params["wp1b"], params["wp2b"])             # (2H, 2H)
    vecs_h = jnp.concatenate([params["br"], params["wa"]], axis=0)   # (2, H)
    vecs_2h = jnp.concatenate([
        jnp.concatenate([params["bp1"], params["bp2"]], axis=1),
        jnp.concatenate([bn1s, bn2s], axis=1),
        jnp.concatenate([bn1h, bn2h], axis=1),
        jnp.concatenate([params["wo1"], params["wo2"]], axis=1),
    ], axis=0)                                                    # (4, 2H)
    scalars = jnp.stack(
        [params["ba"][0, 0],
         params["bo1"][0, 0] + params["bo2"][0, 0]]).astype(jnp.float32)  # (2,)

    # bf16 fast path only on the dominant HBM / MXU operands; f32 accumulation
    # and f32 epilogue (BN / tanh / heads) are unchanged.
    x1c = x1.astype(compute_dtype)
    x2c = x2.astype(compute_dtype)
    wr = params["wr"].astype(compute_dtype)

    args = (x1c, x2c, wr, wpa, wpb, vecs_h, vecs_2h, scalars)

    def whole(a):
        return pl.BlockSpec(a.shape, lambda b, _nd=a.ndim: (0,) * _nd)

    in_specs = [
        pl.BlockSpec((bb, L, E), lambda b: (b, 0, 0)),
        pl.BlockSpec((bb, L, E), lambda b: (b, 0, 0)),
        whole(wr), whole(wpa), whole(wpb), whole(vecs_h), whole(vecs_2h),
        pl.BlockSpec(memory_space=pltpu.MemorySpace.SMEM),
    ]

    flops = 4 * B * L * E * H + 8 * B * L * H + 16 * B * H * H
    bytes_accessed = (2 * B * L * E * x_itemsize + E * H * x_itemsize
                      + 2 * (2 * H) * (2 * H) * 4
                      + (2 * H + 8 * H + 2) * 4 + B * 4)
    cost = pl.CostEstimate(flops=flops, transcendentals=2 * B * H,
                           bytes_accessed=bytes_accessed)

    out = pl.pallas_call(
        muformer_decoder_kernel,
        out_shape=jax.ShapeDtypeStruct((nb, bb, 1), jnp.float32),
        grid_spec=pltpu.PrefetchScalarGridSpec(
            num_scalar_prefetch=0,
            grid=(nb,),
            in_specs=in_specs,
            out_specs=pl.BlockSpec((1, bb, 1), lambda b: (b, 0, 0)),
        ),
        compiler_params=pltpu.CompilerParams(
            dimension_semantics=("parallel",),
            vmem_limit_bytes=int(vmem_limit)),
        cost_estimate=cost,
    )(*args)
    return out.reshape(B, 1)


# ------------------------------ parameters -----------------------------------
def init_params(key, encoder_dim, hidden_size):
    """Parameters in kernel-friendly (in, out) layouts.

    Correspondence with the PyTorch module:
      wr  == fc_reduce.weight.T        br  == fc_reduce.bias[None]
      wa  == fc_attn.weight            ba  == fc_attn.bias[None]
      wp1a/wp1b == fc_pair[1].weight[:, :H].T / [:, H:].T,  bp1 == fc_pair[1].bias[None]
      bn1_* == fc_pair[2].{weight,bias,running_mean,running_var}
      wo1 == fc_pair[4].weight         bo1 == fc_pair[4].bias[None]
      (same for fc_pair2 with index 2)
    """
    E, H = encoder_dim, hidden_size
    ks = iter(jax.random.split(key, 24))
    nk = lambda: next(ks)

    def unif(shape, fan_in):
        s = 1.0 / math.sqrt(fan_in)
        return jax.random.uniform(nk(), shape, jnp.float32, -s, s)

    def head():
        return dict(
            w_a=unif((H, H), 2 * H), w_b=unif((H, H), 2 * H), b=unif((1, H), 2 * H),
            gamma=jax.random.uniform(nk(), (H,), jnp.float32, 0.5, 1.5),
            beta=jax.random.uniform(nk(), (H,), jnp.float32, -0.1, 0.1),
            mean=jax.random.uniform(nk(), (H,), jnp.float32, -0.5, 0.5),
            var=jax.random.uniform(nk(), (H,), jnp.float32, 0.5, 1.5),
            wo=unif((1, H), H), bo=unif((1, 1), H),
        )

    h1, h2 = head(), head()
    return {
        "wr": unif((E, H), E), "br": unif((1, H), E),
        "wa": unif((1, H), H), "ba": unif((1, 1), H),
        "wp1a": h1["w_a"], "wp1b": h1["w_b"], "bp1": h1["b"],
        "bn1_gamma": h1["gamma"], "bn1_beta": h1["beta"],
        "bn1_mean": h1["mean"], "bn1_var": h1["var"],
        "wo1": h1["wo"], "bo1": h1["bo"],
        "wp2a": h2["w_a"], "wp2b": h2["w_b"], "bp2": h2["b"],
        "bn2_gamma": h2["gamma"], "bn2_beta": h2["beta"],
        "bn2_mean": h2["mean"], "bn2_var": h2["var"],
        "wo2": h2["wo"], "bo2": h2["bo"],
    }


# ----------------------------- pure-JAX reference ----------------------------
def muformer_decoder_ref(x1, x2, p):
    def reduce(x):
        return jnp.einsum("ble,eh->blh", x, p["wr"]) + p["br"][0]

    def weight_repr(y):
        w = jnp.einsum("blh,h->bl", y, p["wa"][0]) + p["ba"][0, 0]   # (B, L)
        return jnp.einsum("blh,bl->bh", y, w)                        # (B, H)

    def pair_head(a, b, wA, wB, bias, gamma, beta, mean, var, wo, bo):
        z = a @ wA + b @ wB + bias[0]                                # (B, H)
        z = (z - mean) / jnp.sqrt(var + _BN_EPS) * gamma + beta      # eval BatchNorm1d
        z = jnp.tanh(z)
        return z @ wo[0][:, None] + bo[0, 0]                         # (B, 1)

    y1, y2 = reduce(x1), reduce(x2)
    xw1, xw2 = weight_repr(y1), weight_repr(y2)
    xs1 = (y1[:, 0, :] + y1[:, -1, :]) * 0.5
    xs2 = (y2[:, 0, :] + y2[:, -1, :]) * 0.5
    s_w = pair_head(xw1, xw2, p["wp1a"], p["wp1b"], p["bp1"],
                    p["bn1_gamma"], p["bn1_beta"], p["bn1_mean"], p["bn1_var"],
                    p["wo1"], p["bo1"])
    s_s = pair_head(xs1, xs2, p["wp2a"], p["wp2b"], p["bp2"],
                    p["bn2_gamma"], p["bn2_beta"], p["bn2_mean"], p["bn2_var"],
                    p["wo2"], p["bo2"])
    return s_w + s_s


# ----------------------------------- main ------------------------------------
if __name__ == "__main__":
    B, L, E, H = 2, 8, 64, 32     # batch, seq_len, encoder_dim, hidden_size

    key = jax.random.PRNGKey(0)
    kx1, kx2, kp = jax.random.split(key, 3)
    x1 = jax.random.normal(kx1, (B, L, E), jnp.float32)
    x2 = jax.random.normal(kx2, (B, L, E), jnp.float32)
    params = init_params(kp, E, H)

    ref = muformer_decoder_ref(x1, x2, params)

    # 1) f32, auto block size (fills the generation-aware VMEM budget).
    out_auto = jax.block_until_ready(jax.jit(muformer_decoder)(x1, x2, params))
    # 2) f32, forced bb=1 -> grid=(2,): exercises the multi-step pipelined path.
    out_two = jax.block_until_ready(
        jax.jit(functools.partial(muformer_decoder, batch_block=1))(x1, x2, params))

    for out in (out_auto, out_two):
        assert out.shape == (B, 1)
        err = float(jnp.max(jnp.abs(out - ref)))
        assert jnp.allclose(out, ref, atol=1e-4, rtol=1e-4), f"max abs err {err}"

    # 3) bf16 fast path on the fc_reduce operands; compare against a reference
    #    computed from the same bf16-rounded x / wr (isolates quantization).
    out_bf16 = jax.block_until_ready(
        jax.jit(functools.partial(muformer_decoder,
                                  compute_dtype=jnp.bfloat16))(x1, x2, params))
    rd = lambda a: a.astype(jnp.bfloat16).astype(jnp.float32)
    params_rd = dict(params)
    params_rd["wr"] = rd(params["wr"])
    ref_bf16 = muformer_decoder_ref(rd(x1), rd(x2), params_rd)
    assert out_bf16.shape == (B, 1)
    err_bf = float(jnp.max(jnp.abs(out_bf16 - ref_bf16)))
    assert jnp.allclose(out_bf16, ref_bf16, atol=2e-3, rtol=2e-3), \
        f"bf16 max abs err {err_bf}"

    print("KERNEL_OK")
</pallas_src>

<mosaic_0001>
module attributes {stable_mosaic.version = 11 : i64} {
  func.func @muformer_decoder_kernel(%arg0: i32, %arg1: memref<2x8x64xf32, #tpu.memory_space<vmem>>, %arg2: memref<2x8x64xf32, #tpu.memory_space<vmem>>, %arg3: memref<64x32xf32, #tpu.memory_space<vmem>>, %arg4: memref<64x64xf32, #tpu.memory_space<vmem>>, %arg5: memref<64x64xf32, #tpu.memory_space<vmem>>, %arg6: memref<2x32xf32, #tpu.memory_space<vmem>>, %arg7: memref<4x64xf32, #tpu.memory_space<vmem>>, %arg8: memref<2xf32, #tpu.memory_space<smem>>, %arg9: memref<1x2x1xf32, #tpu.memory_space<vmem>>) attributes {dimension_semantics = [#tpu.dimension_semantics<parallel>], iteration_bounds = array<i64: 1>, scalar_prefetch = 0 : i64, scratch_operands = 0 : i64, tpu.core_type = #tpu.core_type<tc>, window_params = [{transform_indices = @transform_0, window_bounds = array<i64: 2, 8, 64>}, {transform_indices = @transform_1, window_bounds = array<i64: 2, 8, 64>}, {pipeline_mode = #tpu.pipeline_mode<synchronous>, transform_indices = @transform_2, window_bounds = array<i64: 64, 32>}, {pipeline_mode = #tpu.pipeline_mode<synchronous>, transform_indices = @transform_3, window_bounds = array<i64: 64, 64>}, {pipeline_mode = #tpu.pipeline_mode<synchronous>, transform_indices = @transform_4, window_bounds = array<i64: 64, 64>}, {pipeline_mode = #tpu.pipeline_mode<synchronous>, transform_indices = @transform_5, window_bounds = array<i64: 2, 32>}, {pipeline_mode = #tpu.pipeline_mode<synchronous>, transform_indices = @transform_6, window_bounds = array<i64: 4, 64>}, {transform_indices = @transform_7, window_bounds = array<i64: 2>}, {transform_indices = @transform_8, window_bounds = array<i64: 1, 2, 1>}]} {
    %c0 = arith.constant 0 : index
    %c0_0 = arith.constant 0 : index
    %0 = vector.load %arg3[%c0, %c0_0] : memref<64x32xf32, #tpu.memory_space<vmem>>, vector<64x32xf32>
    %c0_1 = arith.constant 0 : index
    %c0_2 = arith.constant 0 : index
    %1 = vector.load %arg6[%c0_1, %c0_2] : memref<2x32xf32, #tpu.memory_space<vmem>>, vector<1x32xf32>
    %c1 = arith.constant 1 : index
    %c0_3 = arith.constant 0 : index
    %2 = vector.load %arg6[%c1, %c0_3] : memref<2x32xf32, #tpu.memory_space<vmem>>, vector<1x32xf32>
    %3 = vector.shape_cast %2 : vector<1x32xf32> to vector<1x1x32xf32>
    %c0_4 = arith.constant 0 : index
    %4 = memref.load %arg8[%c0_4] : memref<2xf32, #tpu.memory_space<smem>>
    %c1_5 = arith.constant 1 : index
    %5 = memref.load %arg8[%c1_5] : memref<2xf32, #tpu.memory_space<smem>>
    %c0_6 = arith.constant 0 : index
    %c0_7 = arith.constant 0 : index
    %c0_8 = arith.constant 0 : index
    %6 = vector.load %arg1[%c0_6, %c0_7, %c0_8] : memref<2x8x64xf32, #tpu.memory_space<vmem>>, vector<2x8x64xf32>
    %7 = vector.shape_cast %6 : vector<2x8x64xf32> to vector<16x64xf32>
    %cst = arith.constant dense<0.000000e+00> : vector<16x32xf32>
    %8 = tpu.matmul %7, %0, %cst {dimension_numbers = #tpu.dot_dimension_numbers<[1], [0], [0], [1], [0, 0, 1, 1], [], []>} : vector<16x64xf32>, vector<64x32xf32>, vector<16x32xf32> -> vector<16x32xf32>
    %9 = vector.broadcast %1 : vector<1x32xf32> to vector<16x32xf32>
    %10 = arith.addf %8, %9 : vector<16x32xf32>
    %11 = vector.shape_cast %10 : vector<16x32xf32> to vector<2x8x32xf32>
    %c0_9 = arith.constant 0 : index
    %c0_10 = arith.constant 0 : index
    %c0_11 = arith.constant 0 : index
    %12 = vector.load %arg2[%c0_9, %c0_10, %c0_11] : memref<2x8x64xf32, #tpu.memory_space<vmem>>, vector<2x8x64xf32>
    %13 = vector.shape_cast %12 : vector<2x8x64xf32> to vector<16x64xf32>
    %cst_12 = arith.constant dense<0.000000e+00> : vector<16x32xf32>
    %14 = tpu.matmul %13, %0, %cst_12 {dimension_numbers = #tpu.dot_dimension_numbers<[1], [0], [0], [1], [0, 0, 1, 1], [], []>} : vector<16x64xf32>, vector<64x32xf32>, vector<16x32xf32> -> vector<16x32xf32>
    %15 = vector.broadcast %1 : vector<1x32xf32> to vector<16x32xf32>
    %16 = arith.addf %14, %15 : vector<16x32xf32>
    %17 = vector.shape_cast %16 : vector<16x32xf32> to vector<2x8x32xf32>
    %18 = vector.broadcast %3 : vector<1x1x32xf32> to vector<2x8x32xf32>
    %19 = arith.mulf %11, %18 : vector<2x8x32xf32>
    %cst_13 = arith.constant dense<0.000000e+00> : vector<2x8xf32>
    %20 = vector.multi_reduction <add>, %19, %cst_13 [2] : vector<2x8x32xf32> to vector<2x8xf32>
    %21 = vector.shape_cast %20 : vector<2x8xf32> to vector<2x8x1xf32>
    %22 = vector.broadcast %4 : f32 to vector<2x8x1xf32>
    %23 = arith.addf %21, %22 : vector<2x8x1xf32>
    %24 = vector.broadcast %23 : vector<2x8x1xf32> to vector<2x8x32xf32>
    %25 = arith.mulf %11, %24 : vector<2x8x32xf32>
    %cst_14 = arith.constant dense<0.000000e+00> : vector<2x32xf32>
    %26 = vector.multi_reduction <add>, %25, %cst_14 [1] : vector<2x8x32xf32> to vector<2x32xf32>
    %27 = vector.extract_strided_slice %11 {offsets = [0, 0, 0], sizes = [2, 1, 32], strides = [1, 1, 1]} : vector<2x8x32xf32> to vector<2x1x32xf32>
    %28 = vector.shape_cast %27 : vector<2x1x32xf32> to vector<2x32xf32>
    %29 = vector.extract_strided_slice %11 {offsets = [0, 7, 0], sizes = [2, 1, 32], strides = [1, 1, 1]} : vector<2x8x32xf32> to vector<2x1x32xf32>
    %30 = vector.shape_cast %29 : vector<2x1x32xf32> to vector<2x32xf32>
    %31 = arith.addf %28, %30 : vector<2x32xf32>
    %cst_15 = arith.constant 5.000000e-01 : f32
    %32 = vector.broadcast %cst_15 : f32 to vector<2x32xf32>
    %33 = arith.mulf %31, %32 : vector<2x32xf32>
    %34 = tpu.concatenate %26, %33 in 1 : vector<2x32xf32>, vector<2x32xf32> -> vector<2x64xf32>
    %35 = vector.broadcast %3 : vector<1x1x32xf32> to vector<2x8x32xf32>
    %36 = arith.mulf %17, %35 : vector<2x8x32xf32>
    %cst_16 = arith.constant dense<0.000000e+00> : vector<2x8xf32>
    %37 = vector.multi_reduction <add>, %36, %cst_16 [2] : vector<2x8x32xf32> to vector<2x8xf32>
    %38 = vector.shape_cast %37 : vector<2x8xf32> to vector<2x8x1xf32>
    %39 = vector.broadcast %4 : f32 to vector<2x8x1xf32>
    %40 = arith.addf %38, %39 : vector<2x8x1xf32>
    %41 = vector.broadcast %40 : vector<2x8x1xf32> to vector<2x8x32xf32>
    %42 = arith.mulf %17, %41 : vector<2x8x32xf32>
    %cst_17 = arith.constant dense<0.000000e+00> : vector<2x32xf32>
    %43 = vector.multi_reduction <add>, %42, %cst_17 [1] : vector<2x8x32xf32> to vector<2x32xf32>
    %44 = vector.extract_strided_slice %17 {offsets = [0, 0, 0], sizes = [2, 1, 32], strides = [1, 1, 1]} : vector<2x8x32xf32> to vector<2x1x32xf32>
    %45 = vector.shape_cast %44 : vector<2x1x32xf32> to vector<2x32xf32>
    %46 = vector.extract_strided_slice %17 {offsets = [0, 7, 0], sizes = [2, 1, 32], strides = [1, 1, 1]} : vector<2x8x32xf32> to vector<2x1x32xf32>
    %47 = vector.shape_cast %46 : vector<2x1x32xf32> to vector<2x32xf32>
    %48 = arith.addf %45, %47 : vector<2x32xf32>
    %cst_18 = arith.constant 5.000000e-01 : f32
    %49 = vector.broadcast %cst_18 : f32 to vector<2x32xf32>
    %50 = arith.mulf %48, %49 : vector<2x32xf32>
    %51 = tpu.concatenate %43, %50 in 1 : vector<2x32xf32>, vector<2x32xf32> -> vector<2x64xf32>
    %c0_19 = arith.constant 0 : index
    %c0_20 = arith.constant 0 : index
    %52 = vector.load %arg4[%c0_19, %c0_20] : memref<64x64xf32, #tpu.memory_space<vmem>>, vector<64x64xf32>
    %cst_21 = arith.constant dense<0.000000e+00> : vector<2x64xf32>
    %53 = tpu.matmul %34, %52, %cst_21 {dimension_numbers = #tpu.dot_dimension_numbers<[1], [0], [0], [1], [0, 0, 1, 1], [], []>} : vector<2x64xf32>, vector<64x64xf32>, vector<2x64xf32> -> vector<2x64xf32>
    %c0_22 = arith.constant 0 : index
    %c0_23 = arith.constant 0 : index
    %54 = vector.load %arg5[%c0_22, %c0_23] : memref<64x64xf32, #tpu.memory_space<vmem>>, vector<64x64xf32>
    %cst_24 = arith.constant dense<0.000000e+00> : vector<2x64xf32>
    %55 = tpu.matmul %51, %54, %cst_24 {dimension_numbers = #tpu.dot_dimension_numbers<[1], [0], [0], [1], [0, 0, 1, 1], [], []>} : vector<2x64xf32>, vector<64x64xf32>, vector<2x64xf32> -> vector<2x64xf32>
    %56 = arith.addf %53, %55 : vector<2x64xf32>
    %c0_25 = arith.constant 0 : index
    %c0_26 = arith.constant 0 : index
    %57 = vector.load %arg7[%c0_25, %c0_26] : memref<4x64xf32, #tpu.memory_space<vmem>>, vector<1x64xf32>
    %58 = vector.broadcast %57 : vector<1x64xf32> to vector<2x64xf32>
    %59 = arith.addf %56, %58 : vector<2x64xf32>
    %c1_27 = arith.constant 1 : index
    %c0_28 = arith.constant 0 : index
    %60 = vector.load %arg7[%c1_27, %c0_28] : memref<4x64xf32, #tpu.memory_space<vmem>>, vector<1x64xf32>
    %61 = vector.broadcast %60 : vector<1x64xf32> to vector<2x64xf32>
    %62 = arith.mulf %59, %61 : vector<2x64xf32>
    %c2 = arith.constant 2 : index
    %c0_29 = arith.constant 0 : index
    %63 = vector.load %arg7[%c2, %c0_29] : memref<4x64xf32, #tpu.memory_space<vmem>>, vector<1x64xf32>
    %64 = vector.broadcast %63 : vector<1x64xf32> to vector<2x64xf32>
    %65 = arith.addf %62, %64 : vector<2x64xf32>
    %66 = math.tanh %65 : vector<2x64xf32>
    %c3 = arith.constant 3 : index
    %c0_30 = arith.constant 0 : index
    %67 = vector.load %arg7[%c3, %c0_30] : memref<4x64xf32, #tpu.memory_space<vmem>>, vector<1x64xf32>
    %68 = vector.broadcast %67 : vector<1x64xf32> to vector<2x64xf32>
    %69 = arith.mulf %66, %68 : vector<2x64xf32>
    %cst_31 = arith.constant dense<0.000000e+00> : vector<2xf32>
    %70 = vector.multi_reduction <add>, %69, %cst_31 [1] : vector<2x64xf32> to vector<2xf32>
    %71 = vector.shape_cast %70 : vector<2xf32> to vector<2x1xf32>
    %72 = vector.broadcast %5 : f32 to vector<2x1xf32>
    %73 = arith.addf %71, %72 : vector<2x1xf32>
    %c0_32 = arith.constant 0 : index
    %c0_33 = arith.constant 0 : index
    %c0_34 = arith.constant 0 : index
    %74 = vector.load %arg9[%c0_32, %c0_33, %c0_34] : memref<1x2x1xf32, #tpu.memory_space<vmem>>, vector<1x2x1xf32>
    %75 = vector.shape_cast %74 : vector<1x2x1xf32> to vector<2x1xf32>
    %76 = vector.shape_cast %73 : vector<2x1xf32> to vector<1x2x1xf32>
    tpu.vector_store %arg9[%c0_32, %c0_33, %c0_34], %76 {strides = array<i32>} : memref<1x2x1xf32, #tpu.memory_space<vmem>>, vector<1x2x1xf32>,
    return
  }
  func.func @transform_0(%arg0: i32) -> (i32, i32, i32) {
    %c0_i32 = arith.constant 0 : i32
    %c0_i32_0 = arith.constant 0 : i32
    %c0_i32_1 = arith.constant 0 : i32
    return %arg0, %c0_i32, %c0_i32_0 : i32, i32, i32
  }
  func.func @transform_1(%arg0: i32) -> (i32, i32, i32) {
    %c0_i32 = arith.constant 0 : i32
    %c0_i32_0 = arith.constant 0 : i32
    %c0_i32_1 = arith.constant 0 : i32
    return %arg0, %c0_i32, %c0_i32_0 : i32, i32, i32
  }
  func.func @transform_2(%arg0: i32) -> (i32, i32) {
    %c0_i32 = arith.constant 0 : i32
    %c0_i32_0 = arith.constant 0 : i32
    %c0_i32_1 = arith.constant 0 : i32
    return %c0_i32, %c0_i32_0 : i32, i32
  }
  func.func @transform_3(%arg0: i32) -> (i32, i32) {
    %c0_i32 = arith.constant 0 : i32
    %c0_i32_0 = arith.constant 0 : i32
    %c0_i32_1 = arith.constant 0 : i32
    return %c0_i32, %c0_i32_0 : i32, i32
  }
  func.func @transform_4(%arg0: i32) -> (i32, i32) {
    %c0_i32 = arith.constant 0 : i32
    %c0_i32_0 = arith.constant 0 : i32
    %c0_i32_1 = arith.constant 0 : i32
    return %c0_i32, %c0_i32_0 : i32, i32
  }
  func.func @transform_5(%arg0: i32) -> (i32, i32) {
    %c0_i32 = arith.constant 0 : i32
    %c0_i32_0 = arith.constant 0 : i32
    %c0_i32_1 = arith.constant 0 : i32
    return %c0_i32, %c0_i32_0 : i32, i32
  }
  func.func @transform_6(%arg0: i32) -> (i32, i32) {
    %c0_i32 = arith.constant 0 : i32
    %c0_i32_0 = arith.constant 0 : i32
    %c0_i32_1 = arith.constant 0 : i32
    return %c0_i32, %c0_i32_0 : i32, i32
  }
  func.func @transform_7(%arg0: i32) -> i32 {
    %c0_i32 = arith.constant 0 : i32
    %c0_i32_0 = arith.constant 0 : i32
    return %c0_i32 : i32
  }
  func.func @transform_8(%arg0: i32) -> (i32, i32, i32) {
    %c0_i32 = arith.constant 0 : i32
    %c0_i32_0 = arith.constant 0 : i32
    %c0_i32_1 = arith.constant 0 : i32
    return %arg0, %c0_i32, %c0_i32_0 : i32, i32, i32
  }
}

</mosaic_0001>

<bundles_post_ra>
// kernel: muformer_decoder.1
= control target key start
LH: loop header
LB: loop body
LE: loop exit
PB: predicated region body
PF: predicated region fallthrough
CT: control target
= control target key end

     0   :  { %13 = vsyncpa [#allocation3], 0  ;;  %s934_s0 = inlined_call_operand.vmem [shape: f32[2,8,64], index: 0, kind: input, shape index: {}]   ;;  %s935_s1 = inlined_call_operand.vmem [shape: f32[2,8,64], index: 1, kind: input, shape index: {}]   ;;  %s936_s2 = inlined_call_operand.vmem [shape: f32[64,32], index: 2, kind: input, shape index: {}]   ;;  %s937_s3 = inlined_call_operand.vmem [shape: f32[64,64], index: 3, kind: input, shape index: {}]   ;;  %s938_s4 = inlined_call_operand.vmem [shape: f32[64,64], index: 4, kind: input, shape index: {}]   ;;  %s939_s5 = inlined_call_operand.vmem [shape: f32[2,32], index: 5, kind: input, shape index: {}]   ;;  %s940_s6 = inlined_call_operand.vmem [shape: f32[4,64], index: 6, kind: input, shape index: {}]   ;;  %s941_s7 = inlined_call_operand.vmem [shape: f32[2], index: 7, kind: input, shape index: {}]   ;;  %s942_s8 = inlined_call_operand.vmem [shape: f32[1,2,1], index: 8, kind: output, shape index: {}]  }
   0x1   :  { %s34_s29 = sshll.u32 %s941_s7, 4  ;;  %s35_s29 = int_to_ptr.vmem [resolvable:$true] %s34_s29 }
   0x2   :  { %s718_s30 = scalar_lea.vmem %s35_s29, 16  ;;  %p723_p1 = scmp.lt.s32.totalorder %s35_s29, %s35_s29 }
   0x3   :  { %p719_p0 = scmp.ne.s32.totalorder %s35_s29, %s718_s30  ;;  %p724_p2 = scmp.lt.s32.totalorder %s718_s30, %s718_s30 }
   0x5   :  { %p725_p3 = por %p724_p2, %p723_p1 }
   0x7   :  { %p726_p4 = pnand %p725_p3, %p719_p0 }
   0x9   :  { %729 = shalt.err (!%p726_p4)
}
   0xa   :  { %s732_s9 = smov [#allocation2]  }
   0xb   :  { %37 = dma.vmem_to_smem %s35_s29, 16, %s732_s9, [#allocation3]  }
   0xc   :  { %730 = dma.done.wait [#allocation3], 16  }
   0xd   :  { %731 = vsyncadd [#allocation3], 4294967280 }
   0xe   :  { %41 = sfence }
   0xf   :  { %v42_v0 = vld [vmem:[%s936_s2] sm:$0xff]  ;;  %v43_v1 = vld [vmem:[%s936_s2 + $0x8] sm:$0xff]  ;;  %v44_v2 = vld [vmem:[%s936_s2 + $0x10] sm:$0xff]  ;;  %vm60_vm0 = vcmask 523264   ;;  %vm231_vm1 = vcmask 261120   ;;  %vm269_vm2 = vcmask 1041409  }
  0x10   :  { %v655_v3 = vpack.c.bf16 %v43_v1, %v42_v0  ;;  %v45_v4 = vld [vmem:[%s936_s2 + $0x18] sm:$0xff]  ;;  %v46_v6 = vld [vmem:[%s936_s2 + $0x20] sm:$0xff]  ;;  %v47_v7 = vld [vmem:[%s936_s2 + $0x28] sm:$0xff]  ;;  %s733_s18 = smov 32   ;;  %v734_v52 = vmov 0.0|0.0   ;;  %vm735_vm3 = vmmov 0  }
  0x11   :  { %v659_v5 = vpack.c.bf16 %v45_v4, %v44_v2  ;;  %v54_v8 = vld [vmem:[%s934_s0] sm:$0xff]  ;;  %v663_v10 = vpack.c.bf16 %v47_v7, %v46_v6  ;;  %v48_v11 = vld [vmem:[%s936_s2 + $0x30] sm:$0xff]  ;;  %v49_v12 = vld [vmem:[%s936_s2 + $0x38] sm:$0xff]  ;;  %s52_s16 = sld [smem:[#allocation2]]  ;;  %vm515_vm4 = vcmask 517120   ;;  %s528_s23 = sld [smem:[#allocation2 + $0x1]] }
  0x12   :  { %656 = vmatprep.subr.bf16.mxu0 %v655_v3  ;;  %672 = vmatprep.subr.bf16.mxu1 %v655_v3  ;;  %v142_v9 = vld [vmem:[%s935_s1] sm:$0xff]  ;;  %v667_v13 = vpack.c.bf16 %v49_v12, %v48_v11  ;;  %v55_v14 = vld [vmem:[%s934_s0 + $0x8] sm:$0xff]  ;;  %v338_v56 = vld [vmem:[%s938_s4 + $0x10] sm:$0xff]  ;;  %v736_v11 = vmov 0.0   ;;  %vm521_vm5 = vcmask 1024  }
  0x13   :  { %658 = vmatpush3.bf16.msra.mxu0 %v655_v3  ;;  %674 = vmatpush3.bf16.msra.mxu1 %v655_v3  ;;  %v143_v15 = vld [vmem:[%s935_s1 + $0x8] sm:$0xff]  ;;  %v529_v16 = vld [vmem:[%s939_s5] ss:$0 sm:$0xff]  ;;  %v534_v19 = vld [vmem:[%s939_s5 + $0x1] ss:$0 sm:$0xff] }
  0x14   :  { %660 = vmatprep.subr.bf16.mxu0 %v659_v5  ;;  %676 = vmatprep.subr.bf16.mxu1 %v659_v5  ;;  %v336_v46 = vld [vmem:[%s938_s4] sm:$0xff]  ;;  %v337_v47 = vld [vmem:[%s938_s4 + $0x8] sm:$0xff]  ;;  %v339_v57 = vld [vmem:[%s938_s4 + $0x18] sm:$0xff] }
  0x15   :  { %595 = vmatprep.mubr.msk.f32.mxu0 %vm60_vm0, %v54_v8  ;;  %614 = vmatprep.mubr.msk.f32.mxu1 %vm60_vm0, %v142_v9  ;;  %v688_v49 = vpack.c.bf16 %v337_v47, %v336_v46  ;;  %v328_v50 = vld [vmem:[%s937_s3] sm:$0xff]  ;;  %v329_v51 = vld [vmem:[%s937_s3 + $0x8] sm:$0xff]  ;;  %v691_v58 = vpack.c.bf16 %v339_v57, %v338_v56  ;;  %v330_v59 = vld [vmem:[%s937_s3 + $0x10] sm:$0xff] }
  0x16   :  { %v700_v53 = vpack.c.bf16 %v329_v51, %v328_v50  ;;  %v331_v60 = vld [vmem:[%s937_s3 + $0x18] sm:$0xff]  ;;  %v340_v63 = vld [vmem:[%s938_s4 + $0x20] sm:$0xff]  ;;  %v341_v0 = vld [vmem:[%s938_s4 + $0x28] sm:$0xff] }
  0x17   :  { %662 = vmatpush3.bf16.msra.mxu0 %v659_v5  ;;  %678 = vmatpush3.bf16.msra.mxu1 %v659_v5  ;;  %v703_v61 = vpack.c.bf16 %v331_v60, %v330_v59  ;;  %v694_v1 = vpack.c.bf16 %v341_v0, %v340_v63  ;;  %v332_v2 = vld [vmem:[%s937_s3 + $0x20] sm:$0xff]  ;;  %v333_v3 = vld [vmem:[%s937_s3 + $0x28] sm:$0xff]  ;;  %v342_v5 = vld [vmem:[%s938_s4 + $0x30] sm:$0xff]  ;;  %v238_v12 = vstv %s52_s16 }
  0x18   :  { %664 = vmatprep.subr.bf16.mxu0 %v663_v10  ;;  %680 = vmatprep.subr.bf16.mxu1 %v663_v10  ;;  %v706_v4 = vpack.c.bf16 %v333_v3, %v332_v2  ;;  %v343_v6 = vld [vmem:[%s938_s4 + $0x38] sm:$0xff]  ;;  %v334_v8 = vld [vmem:[%s937_s3 + $0x30] sm:$0xff]  ;;  %v539_v3 = vld [vmem:[%s940_s6 + $0x2] ss:$0 sm:$0xff] }
  0x19   :  { %v697_v7 = vpack.c.bf16 %v343_v6, %v342_v5  ;;  %v335_v9 = vld [vmem:[%s937_s3 + $0x38] sm:$0xff]  ;;  %v540_v6 = vld [vmem:[%s940_s6 + $0x3] ss:$0 sm:$0xff] }
  0x1b   :  { %666 = vmatpush3.bf16.msra.mxu0 %v663_v10  ;;  %682 = vmatpush3.bf16.msra.mxu1 %v663_v10  ;;  %v709_v10 = vpack.c.bf16 %v335_v9, %v334_v8 }
  0x1c   :  { %668 = vmatprep.subr.bf16.mxu0 %v667_v13  ;;  %684 = vmatprep.subr.bf16.mxu1 %v667_v13 }
  0x1f   :  { %670 = vmatpush3.bf16.msra.mxu0 %v667_v13  ;;  %686 = vmatpush3.bf16.msra.mxu1 %v667_v13 }
  0x20   :  { %687 = vmatprep.subr.bf16.mxu0 %v734_v52  ;;  %699 = vmatprep.subr.bf16.mxu1 %v734_v52 }
  0x22   :  { %596 = vmatmul.mubr.msk.f32.vlgmr.msra.gmra.mrb[0].mxu0 %vm60_vm0, %v55_v14  ;;  %615 = vmatmul.mubr.msk.f32.vlgmr.msra.gmra.mrb[0].mxu1 %vm60_vm0, %v143_v15 }
  0x23   :  { %689 = vmatpush3.bf16.msra.mxu0 %v688_v49  ;;  %701 = vmatpush3.bf16.msra.mxu1 %v700_v53 }
  0x24   :  { %690 = vmatprep.subr.bf16.mxu0 %v734_v52  ;;  %702 = vmatprep.subr.bf16.mxu1 %v734_v52 }
  0x25   :  { %633 = vmatprep.mubr.msk.f32.mxu0 %vm735_vm3, %v736_v11  ;;  %652 = vmatprep.mubr.msk.f32.mxu1 %vm735_vm3, %v736_v11 }
  0x27   :  { %692 = vmatpush3.bf16.msra.mxu0 %v691_v58  ;;  %704 = vmatpush3.bf16.msra.mxu1 %v703_v61 }
  0x28   :  { %693 = vmatprep.subr.bf16.mxu0 %v734_v52  ;;  %705 = vmatprep.subr.bf16.mxu1 %v734_v52 }
  0x2b   :  { %695 = vmatpush3.bf16.msra.mxu0 %v694_v1  ;;  %707 = vmatpush3.bf16.msra.mxu1 %v706_v4  ;;  %v538_v1 = vld [vmem:[%s940_s6 + $0x1] ss:$0 sm:$0xff] }
  0x2c   :  { %696 = vmatprep.subr.bf16.mxu0 %v734_v52  ;;  %708 = vmatprep.subr.bf16.mxu1 %v734_v52 }
  0x2f   :  { %698 = vmatpush3.bf16.msra.mxu0 %v697_v7  ;;  %710 = vmatpush3.bf16.msra.mxu1 %v709_v10  ;;  %v519_v10 = vstv %s528_s23 }
  0xf5   :  { %v597_v17 = vpop.f32.mrb[0].mxu0  ;;  %v616_v18 = vpop.f32.mrb[0].mxu1 }
  0xf6   :  { %v831_v20 = vadd.f32 %v616_v18, %v529_v16  ;;  %v133_v21 = vpop.f32.mrb[1].mxu0  ;;  %v216_v22 = vpop.f32.mrb[1].mxu1  ;;  %v833_v23 = vadd.f32 %v597_v17, %v529_v16 }
  0xf7   :  { %v835_v24 = vadd.f32 %v529_v16, %v133_v21  ;;  %v837_v25 = vadd.f32 %v529_v16, %v216_v22 }
  0xf8   :  { %v281_v26 = vmul.f32 %v534_v19, %v831_v20  ;;  %v230_v31 = vmul.f32 %v534_v19, %v833_v23  ;;  %v309_v33 = vrot.slane %v831_v20, 7  ;;  %v260_v37 = vrot.slane %v833_v23, 7 }
  0xf9   :  { %v229_v27 = vmul.f32 %v534_v19, %v835_v24  ;;  %v280_v29 = vmul.f32 %v534_v19, %v837_v25  ;;  %v308_v35 = vrot.slane %v837_v25, 7  ;;  %v259_v40 = vrot.slane %v835_v24, 7 }
  0xfa   :  { %v285_v28 = vsel %vm231_vm1, %v281_v26, 0.0  ;;  %v235_v34 = vsel %vm231_vm1, %v230_v31, 0.0  ;;  %v313_v36 = vadd.f32 %v309_v33, %v831_v20  ;;  %v264_v41 = vadd.f32 %v260_v37, %v833_v23 }
  0xfb   :  { %286 = vadd.xlane.f32.xlu1 %v285_v28  ;;  %v232_v30 = vsel %vm231_vm1, %v229_v27, 0.0  ;;  %v282_v32 = vsel %vm231_vm1, %v280_v29, 0.0  ;;  %v312_v38 = vadd.f32 %v308_v35, %v837_v25  ;;  %v263_v44 = vadd.f32 %v259_v40, %v835_v24 }
  0xfc   :  { %233 = vadd.xlane.f32.xlu0 %v232_v30  ;;  %v315_v39 = vmul.f32 0.5, %v313_v36  ;;  %v266_v45 = vmul.f32 0.5, %v264_v41 }
  0xfd   :  { %v314_v42 = vmul.f32 0.5, %v312_v38  ;;  %v265_v54 = vmul.f32 0.5, %v263_v44 }
  0xfe   :  { %v322_v43 = vrot.slane %v315_v39, 7  ;;  %v274_v55 = vrot.slane %v266_v45, 7 }
  0xff   :  { %283 = vadd.xlane.f32.xlu1 %v282_v32 }
 0x100   :  { %236 = vadd.xlane.f32.xlu0 %v235_v34  ;;  %v323_v48 = vsel %vm269_vm2, %v322_v43, %v314_v42  ;;  %v275_v62 = vsel %vm269_vm2, %v274_v55, %v265_v54 }
 0x110   :  { %324 = vrot.lane.b32.xlu1 %v323_v48, %s733_s18 }
 0x116   :  { %276 = vrot.lane.b32.xlu0 %v275_v62, %s733_s18  ;;  %v537_v62 = vld [vmem:[%s940_s6] ss:$0 sm:$0xff] }
 0x188   :  { %v287_v13 = vpop.xlane.xlu1 %286 }
 0x189   :  { %v289_v14 = vadd.f32 %v287_v13, %v238_v12  ;;  %v234_v15 = vpop.xlane.xlu0 %233 }
 0x18a   :  { %v239_v16 = vadd.f32 %v238_v12, %v234_v15 }
 0x18b   :  { %v291_v17 = vmul.f32 %v289_v14, %v831_v20 }
 0x18c   :  { %v241_v18 = vmul.f32 %v239_v16, %v835_v24  ;;  %v284_v19 = vpop.xlane.xlu1 %283 }
 0x18d   :  { %v299_v21 = vsel %vm231_vm1, %v291_v17, 0.0  ;;  %v288_v22 = vadd.f32 %v284_v19, %v238_v12  ;;  %v237_v26 = vpop.xlane.xlu0 %236 }
 0x18e   :  { %v300_v27 = vrot.slane %v299_v21, 4  ;;  %v243_v28 = vsel %vm231_vm1, %v241_v18, 0.0  ;;  %v240_v29 = vadd.f32 %v238_v12, %v237_v26 }
 0x18f   :  { %v244_v30 = vrot.slane %v243_v28, 4  ;;  %v290_v31 = vmul.f32 %v288_v22, %v837_v25 }
 0x190   :  { %v301_v32 = vadd.f32 %v300_v27, %v299_v21  ;;  %v242_v33 = vmul.f32 %v240_v29, %v833_v23  ;;  %v325_v54 = vpop.permute.xlu1 %324 }
 0x191   :  { %v245_v34 = vadd.f32 %v244_v30, %v243_v28  ;;  %v292_v20 = vsel %vm231_vm1, %v290_v31, 0.0  ;;  %v277_v57 = vpop.permute.xlu0 %276 }
 0x192   :  { %v302_v35 = vrot.slane %v301_v32, 2  ;;  %v293_v24 = vrot.slane %v292_v20, 4  ;;  %v250_v36 = vsel %vm231_vm1, %v242_v33, 0.0 }
 0x193   :  { %v246_v37 = vrot.slane %v245_v34, 2  ;;  %v251_v38 = vrot.slane %v250_v36, 4 }
 0x194   :  { %v303_v39 = vadd.f32 %v302_v35, %v301_v32  ;;  %v294_v40 = vadd.f32 %v293_v24, %v292_v20 }
 0x195   :  { %v247_v41 = vadd.f32 %v246_v37, %v245_v34  ;;  %v252_v42 = vadd.f32 %v251_v38, %v250_v36 }
 0x196   :  { %v295_v43 = vrot.slane %v294_v40, 2  ;;  %v304_v45 = vrot.slane %v303_v39, 1 }
 0x197   :  { %v253_v44 = vrot.slane %v252_v42, 2  ;;  %v248_v46 = vrot.slane %v247_v41, 1 }
 0x198   :  { %v296_v25 = vadd.f32 %v295_v43, %v294_v40  ;;  %v305_v50 = vadd.f32 %v304_v45, %v303_v39 }
 0x199   :  { %v254_v47 = vadd.f32 %v253_v44, %v252_v42  ;;  %v249_v51 = vadd.f32 %v248_v46, %v247_v41 }
 0x19a   :  { %v297_v23 = vrot.slane %v296_v25, 1 }
 0x19b   :  { %v255_v48 = vrot.slane %v254_v47, 1 }
 0x19c   :  { %v298_v49 = vadd.f32 %v297_v23, %v296_v25 }
 0x19d   :  { %v256_v52 = vadd.f32 %v255_v48, %v254_v47 }
 0x19e   :  { %v318_v53 = vsel %vm269_vm2, %v305_v50, %v298_v49 }
 0x19f   :  { %v327_v55 = vsel %vm231_vm1, %v318_v53, %v325_v54  ;;  %v270_v56 = vsel %vm269_vm2, %v256_v52, %v249_v51 }
 0x1a0   :  { %v279_v58 = vsel %vm231_vm1, %v270_v56, %v277_v57  ;;  %634 = vmatmul.mubr.msk.f32.vlgmr.msra.gmra.mrb[2].mxu0 %vm60_vm0, %v327_v55 }
 0x1a1   :  { %653 = vmatmul.mubr.msk.f32.vlgmr.msra.gmra.mrb[2].mxu1 %vm60_vm0, %v279_v58 }
 0x273   :  { %v413_v59 = vpop.f32.mrb[2].mxu0 }
 0x274   :  { %v635_v60 = vpop.f32.mrb[3].mxu0  ;;  %v486_v61 = vpop.f32.mrb[2].mxu1 }
 0x275   :  { %v487_v63 = vadd.f32 %v486_v61, %v413_v59  ;;  %v654_v0 = vpop.f32.mrb[3].mxu1 }
 0x277   :  { %v495_v2 = vadd.f32 %v537_v62, %v487_v63 }
 0x279   :  { %v501_v4 = vmul.f32 %v538_v1, %v495_v2 }
 0x27b   :  { %v507_v5 = vadd.f32 %v539_v3, %v501_v4 }
 0x27d   :  { %716 = vtanh.f32 %v507_v5 }
 0x287   :  { %v717_v7 = vpop.eup %716 }
 0x288   :  { %v514_v8 = vmul.f32 %v717_v7, %v540_v6 }
 0x28a   :  { %v516_v9 = vsel %vm515_vm4, %v514_v8, 0.0 }
 0x28b   :  { %517 = vadd.xlane.f32.xlu1 %v516_v9 }
 0x318   :  { %v518_v11 = vpop.xlane.xlu1 %517 }
 0x319   :  { %v520_v12 = vadd.f32 %v519_v10, %v518_v11 }
 0x31b   :  { %522 = vst.msk [vmem:[%s942_s8] sm:$0x3] %vm521_vm5, %v520_v12 }
 0x31c   :  { %527 = vsyncpa [#allocation3], 1 }

</bundles_post_ra>
